<compile_context>
chip_gen: v6e
topology: v6e:2x2x1
jax: 0.10.0
libtpu: 0.0.40
codegen_flags: <defaults>
</compile_context>

<pallas_src>
import functools

import jax
import jax.numpy as jnp
from jax import lax
from jax.experimental import pallas as pl

STEPS = 3
LANE = 128
SUBLANE = 8


def _round_up(x, m):
    return (x + m - 1) // m * m


def _pad2d(x, rows, cols):
    if x.shape == (rows, cols):
        return x
    return jnp.zeros((rows, cols), x.dtype).at[: x.shape[0], : x.shape[1]].set(x)


def _mean_field_kernel(node_ref, edge_ref, e2n_ref, n2n_ref, red_ref,
                       wn_ref, we_ref, wrec_ref, o_ref):
    """Single-block kernel: the whole (padded) problem is VMEM resident."""
    f32 = jnp.float32

    # input_message = node_feat @ Wn + e2n @ (edge_feat @ We)   (all in vregs)
    edge_msg = jnp.dot(edge_ref[...], we_ref[...], preferred_element_type=f32)
    input_message = (
        jnp.dot(node_ref[...], wn_ref[...], preferred_element_type=f32)
        + jnp.dot(e2n_ref[...], edge_msg, preferred_element_type=f32))

    # message = activation(input_message)
    message = jnp.maximum(input_message, 0.0)

    # mean-field iterations (unrolled for LLO scheduler visibility)
    def body(_, msg):
        agg = jnp.dot(n2n_ref[...], msg, preferred_element_type=f32)
        rec = jnp.dot(agg, wrec_ref[...], preferred_element_type=f32)
        return jnp.maximum(input_message + rec, 0.0)

    message = lax.fori_loop(0, STEPS, body, message, unroll=True)

    # Graph read-out: padded rows/cols of `red` are zero -> padded output is 0.
    o_ref[...] = jnp.dot(red_ref[...], message, preferred_element_type=f32)


def prepare_weights(wn_t, we_t, wrec_t):
    """Pad the Linear weights once (hoisted out of the per-call hot path).

    Returns lane-dense padded weights ([FnP,128], [FeP,128], [128,128]) and the
    original out_size for slicing the padded output.
    """
    f32 = jnp.float32
    fn, out = wn_t.shape
    fe = we_t.shape[0]
    fnp = _round_up(fn, SUBLANE)
    fep = _round_up(fe, SUBLANE)
    outp = _round_up(out, LANE)
    wn_p = _pad2d(wn_t.astype(f32), fnp, outp)
    we_p = _pad2d(we_t.astype(f32), fep, outp)
    wrec_p = _pad2d(wrec_t.astype(f32), outp, outp)
    return wn_p, we_p, wrec_p, out


@functools.partial(jax.jit, static_argnames=("out_size",))
def mean_field_inference(node_feat, edge_feat, n2n, e2n, reduction,
                         wn_p, we_p, wrec_p, *, out_size):
    """Jitted forward pass. Weights must already be padded via prepare_weights."""
    f32 = jnp.float32
    n = node_feat.shape[0]
    e = edge_feat.shape[0]
    g = reduction.shape[0]
    fnp = wn_p.shape[0]
    fep = we_p.shape[0]
    outp = wn_p.shape[1]

    nP = _round_up(n, SUBLANE)
    eP = _round_up(e, SUBLANE)
    gP = _round_up(g, SUBLANE)

    # Graph-tensor padding stays inside jit (fused, no eager dispatch).
    node_p = _pad2d(node_feat.astype(f32), nP, fnp)
    edge_p = _pad2d(edge_feat.astype(f32), eP, fep)
    n2n_p = _pad2d(n2n.astype(f32), nP, nP)
    e2n_p = _pad2d(e2n.astype(f32), nP, eP)
    red_p = _pad2d(reduction.astype(f32), gP, nP)

    args = (node_p, edge_p, e2n_p, n2n_p, red_p, wn_p, we_p, wrec_p)
    full = lambda a: pl.BlockSpec(a.shape, lambda: (0,) * a.ndim)

    out_p = pl.pallas_call(
        _mean_field_kernel,
        out_shape=jax.ShapeDtypeStruct((gP, outp), f32),
        grid_spec=pl.GridSpec(
            grid=(),
            in_specs=[full(a) for a in args],
            out_specs=pl.BlockSpec((gP, outp), lambda: (0, 0)),
        ),
    )(*args)

    return out_p[:g, :out_size]


def reference(node_feat, edge_feat, wn_t, we_t, wrec_t, n2n, e2n, reduction):
    input_message = node_feat @ wn_t + e2n @ (edge_feat @ we_t)
    message = jnp.maximum(input_message, 0.0)
    for _ in range(STEPS):
        message = jnp.maximum(input_message + (n2n @ message) @ wrec_t, 0.0)
    return reduction @ message


if __name__ == "__main__":
    key = jax.random.PRNGKey(0)
    N, E, G = 16, 24, 2           # nodes, edges, graphs
    Fn, Fe, OUT = 8, 4, 32        # node feats, edge feats, out_size

    ks = jax.random.split(key, 8)
    node_feat = jax.random.normal(ks[0], (N, Fn), dtype=jnp.float32)
    edge_feat = jax.random.normal(ks[1], (E, Fe), dtype=jnp.float32)

    # Deterministic "Linear(bias=False)" weights, stored transposed [in, out].
    wn_t = jax.random.normal(ks[2], (Fn, OUT), dtype=jnp.float32) * (1.0 / Fn ** 0.5)
    we_t = jax.random.normal(ks[3], (Fe, OUT), dtype=jnp.float32) * (1.0 / Fe ** 0.5)
    wrec_t = jax.random.normal(ks[4], (OUT, OUT), dtype=jnp.float32) * (1.0 / OUT ** 0.5)

    # Dense stand-ins for the sparse structure matrices.
    n2n = (jax.random.uniform(ks[5], (N, N)) < 0.25).astype(jnp.float32)
    n2n = n2n * (1.0 - jnp.eye(N, dtype=jnp.float32))      # no self loops
    e2n = (jax.random.uniform(ks[6], (N, E)) < 0.15).astype(jnp.float32)
    # reduction: each node assigned to one of G graphs (row-stochastic pooling)
    assign = jax.random.randint(ks[7], (N,), 0, G)
    reduction = (jnp.arange(G)[:, None] == assign[None, :]).astype(jnp.float32)

    # Pad weights once (hoisted out of the hot path), then run the jitted call.
    wn_p, we_p, wrec_p, out_size = prepare_weights(wn_t, we_t, wrec_t)
    wn_p, we_p, wrec_p = map(jax.block_until_ready, (wn_p, we_p, wrec_p))

    out = mean_field_inference(node_feat, edge_feat, n2n, e2n, reduction,
                               wn_p, we_p, wrec_p, out_size=out_size)
    out = jax.block_until_ready(out)

    ref = reference(node_feat, edge_feat, wn_t, we_t, wrec_t, n2n, e2n, reduction)
    assert out.shape == (G, OUT)
    assert jnp.allclose(out, ref, atol=1e-4, rtol=1e-4), "mismatch vs reference"
    print("KERNEL_OK")
</pallas_src>

<mosaic_0001>
module attributes {stable_mosaic.version = 11 : i64} {
  func.func @_mean_field_kernel(%arg0: memref<16x8xf32, #tpu.memory_space<vmem>>, %arg1: memref<24x8xf32, #tpu.memory_space<vmem>>, %arg2: memref<16x24xf32, #tpu.memory_space<vmem>>, %arg3: memref<16x16xf32, #tpu.memory_space<vmem>>, %arg4: memref<8x16xf32, #tpu.memory_space<vmem>>, %arg5: memref<8x128xf32, #tpu.memory_space<vmem>>, %arg6: memref<8x128xf32, #tpu.memory_space<vmem>>, %arg7: memref<128x128xf32, #tpu.memory_space<vmem>>, %arg8: memref<8x128xf32, #tpu.memory_space<vmem>>) attributes {dimension_semantics = [], scalar_prefetch = 0 : i64, scratch_operands = 0 : i64, tpu.core_type = #tpu.core_type<tc>} {
    %c0 = arith.constant 0 : index
    %c0_0 = arith.constant 0 : index
    %0 = vector.load %arg1[%c0, %c0_0] : memref<24x8xf32, #tpu.memory_space<vmem>>, vector<24x8xf32>
    %c0_1 = arith.constant 0 : index
    %c0_2 = arith.constant 0 : index
    %1 = vector.load %arg6[%c0_1, %c0_2] : memref<8x128xf32, #tpu.memory_space<vmem>>, vector<8x128xf32>
    %cst = arith.constant dense<0.000000e+00> : vector<24x128xf32>
    %2 = tpu.matmul %0, %1, %cst {dimension_numbers = #tpu.dot_dimension_numbers<[1], [0], [0], [1], [0, 0, 1, 1], [], []>} : vector<24x8xf32>, vector<8x128xf32>, vector<24x128xf32> -> vector<24x128xf32>
    %c0_3 = arith.constant 0 : index
    %c0_4 = arith.constant 0 : index
    %3 = vector.load %arg0[%c0_3, %c0_4] : memref<16x8xf32, #tpu.memory_space<vmem>>, vector<16x8xf32>
    %c0_5 = arith.constant 0 : index
    %c0_6 = arith.constant 0 : index
    %4 = vector.load %arg5[%c0_5, %c0_6] : memref<8x128xf32, #tpu.memory_space<vmem>>, vector<8x128xf32>
    %cst_7 = arith.constant dense<0.000000e+00> : vector<16x128xf32>
    %5 = tpu.matmul %3, %4, %cst_7 {dimension_numbers = #tpu.dot_dimension_numbers<[1], [0], [0], [1], [0, 0, 1, 1], [], []>} : vector<16x8xf32>, vector<8x128xf32>, vector<16x128xf32> -> vector<16x128xf32>
    %c0_8 = arith.constant 0 : index
    %c0_9 = arith.constant 0 : index
    %6 = vector.load %arg2[%c0_8, %c0_9] : memref<16x24xf32, #tpu.memory_space<vmem>>, vector<16x24xf32>
    %cst_10 = arith.constant dense<0.000000e+00> : vector<16x128xf32>
    %7 = tpu.matmul %6, %2, %cst_10 {dimension_numbers = #tpu.dot_dimension_numbers<[1], [0], [0], [1], [0, 0, 1, 1], [], []>} : vector<16x24xf32>, vector<24x128xf32>, vector<16x128xf32> -> vector<16x128xf32>
    %8 = arith.addf %5, %7 : vector<16x128xf32>
    %cst_11 = arith.constant 0.000000e+00 : f32
    %9 = vector.broadcast %cst_11 : f32 to vector<16x128xf32>
    %10 = arith.maximumf %8, %9 : vector<16x128xf32>
    %c0_i32 = arith.constant 0 : i32
    %c0_12 = arith.constant 0 : index
    %c0_13 = arith.constant 0 : index
    %11 = vector.load %arg3[%c0_12, %c0_13] : memref<16x16xf32, #tpu.memory_space<vmem>>, vector<16x16xf32>
    %cst_14 = arith.constant dense<0.000000e+00> : vector<16x128xf32>
    %12 = tpu.matmul %11, %10, %cst_14 {dimension_numbers = #tpu.dot_dimension_numbers<[1], [0], [0], [1], [0, 0, 1, 1], [], []>} : vector<16x16xf32>, vector<16x128xf32>, vector<16x128xf32> -> vector<16x128xf32>
    %c0_15 = arith.constant 0 : index
    %c0_16 = arith.constant 0 : index
    %13 = vector.load %arg7[%c0_15, %c0_16] : memref<128x128xf32, #tpu.memory_space<vmem>>, vector<128x128xf32>
    %cst_17 = arith.constant dense<0.000000e+00> : vector<16x128xf32>
    %14 = tpu.matmul %12, %13, %cst_17 {dimension_numbers = #tpu.dot_dimension_numbers<[1], [0], [0], [1], [0, 0, 1, 1], [], []>} : vector<16x128xf32>, vector<128x128xf32>, vector<16x128xf32> -> vector<16x128xf32>
    %15 = arith.addf %8, %14 : vector<16x128xf32>
    %cst_18 = arith.constant 0.000000e+00 : f32
    %16 = vector.broadcast %cst_18 : f32 to vector<16x128xf32>
    %17 = arith.maximumf %15, %16 : vector<16x128xf32>
    %c1_i32 = arith.constant 1 : i32
    %c0_19 = arith.constant 0 : index
    %c0_20 = arith.constant 0 : index
    %18 = vector.load %arg3[%c0_19, %c0_20] : memref<16x16xf32, #tpu.memory_space<vmem>>, vector<16x16xf32>
    %cst_21 = arith.constant dense<0.000000e+00> : vector<16x128xf32>
    %19 = tpu.matmul %18, %17, %cst_21 {dimension_numbers = #tpu.dot_dimension_numbers<[1], [0], [0], [1], [0, 0, 1, 1], [], []>} : vector<16x16xf32>, vector<16x128xf32>, vector<16x128xf32> -> vector<16x128xf32>
    %c0_22 = arith.constant 0 : index
    %c0_23 = arith.constant 0 : index
    %20 = vector.load %arg7[%c0_22, %c0_23] : memref<128x128xf32, #tpu.memory_space<vmem>>, vector<128x128xf32>
    %cst_24 = arith.constant dense<0.000000e+00> : vector<16x128xf32>
    %21 = tpu.matmul %19, %20, %cst_24 {dimension_numbers = #tpu.dot_dimension_numbers<[1], [0], [0], [1], [0, 0, 1, 1], [], []>} : vector<16x128xf32>, vector<128x128xf32>, vector<16x128xf32> -> vector<16x128xf32>
    %22 = arith.addf %8, %21 : vector<16x128xf32>
    %cst_25 = arith.constant 0.000000e+00 : f32
    %23 = vector.broadcast %cst_25 : f32 to vector<16x128xf32>
    %24 = arith.maximumf %22, %23 : vector<16x128xf32>
    %c2_i32 = arith.constant 2 : i32
    %c0_26 = arith.constant 0 : index
    %c0_27 = arith.constant 0 : index
    %25 = vector.load %arg3[%c0_26, %c0_27] : memref<16x16xf32, #tpu.memory_space<vmem>>, vector<16x16xf32>
    %cst_28 = arith.constant dense<0.000000e+00> : vector<16x128xf32>
    %26 = tpu.matmul %25, %24, %cst_28 {dimension_numbers = #tpu.dot_dimension_numbers<[1], [0], [0], [1], [0, 0, 1, 1], [], []>} : vector<16x16xf32>, vector<16x128xf32>, vector<16x128xf32> -> vector<16x128xf32>
    %c0_29 = arith.constant 0 : index
    %c0_30 = arith.constant 0 : index
    %27 = vector.load %arg7[%c0_29, %c0_30] : memref<128x128xf32, #tpu.memory_space<vmem>>, vector<128x128xf32>
    %cst_31 = arith.constant dense<0.000000e+00> : vector<16x128xf32>
    %28 = tpu.matmul %26, %27, %cst_31 {dimension_numbers = #tpu.dot_dimension_numbers<[1], [0], [0], [1], [0, 0, 1, 1], [], []>} : vector<16x128xf32>, vector<128x128xf32>, vector<16x128xf32> -> vector<16x128xf32>
    %29 = arith.addf %8, %28 : vector<16x128xf32>
    %cst_32 = arith.constant 0.000000e+00 : f32
    %30 = vector.broadcast %cst_32 : f32 to vector<16x128xf32>
    %31 = arith.maximumf %29, %30 : vector<16x128xf32>
    %c0_33 = arith.constant 0 : index
    %c0_34 = arith.constant 0 : index
    %32 = vector.load %arg4[%c0_33, %c0_34] : memref<8x16xf32, #tpu.memory_space<vmem>>, vector<8x16xf32>
    %cst_35 = arith.constant dense<0.000000e+00> : vector<8x128xf32>
    %33 = tpu.matmul %32, %31, %cst_35 {dimension_numbers = #tpu.dot_dimension_numbers<[1], [0], [0], [1], [0, 0, 1, 1], [], []>} : vector<8x16xf32>, vector<16x128xf32>, vector<8x128xf32> -> vector<8x128xf32>
    %c0_36 = arith.constant 0 : index
    %c0_37 = arith.constant 0 : index
    %34 = vector.load %arg8[%c0_36, %c0_37] : memref<8x128xf32, #tpu.memory_space<vmem>>, vector<8x128xf32>
    tpu.vector_store %arg8[%c0_36, %c0_37], %33 {strides = array<i32>} : memref<8x128xf32, #tpu.memory_space<vmem>>, vector<8x128xf32>,
    return
  }
}

</mosaic_0001>

<bundles_post_ra>
// kernel: mean_field_inference.1
= control target key start
LH: loop header
LB: loop body
LE: loop exit
PB: predicated region body
PF: predicated region fallthrough
CT: control target
= control target key end

     0   :  { %13 = vsyncpa [#allocation3], 0  ;;  %s1497_s0 = inlined_call_operand.vmem [shape: f32[16,8], index: 0, kind: input, shape index: {}]   ;;  %s1498_s1 = inlined_call_operand.vmem [shape: f32[24,8], index: 1, kind: input, shape index: {}]   ;;  %s1499_s2 = inlined_call_operand.vmem [shape: f32[16,24], index: 2, kind: input, shape index: {}]   ;;  %s1500_s3 = inlined_call_operand.vmem [shape: f32[16,16], index: 3, kind: input, shape index: {}]   ;;  %s1501_s4 = inlined_call_operand.vmem [shape: f32[8,16], index: 4, kind: input, shape index: {}]   ;;  %s1502_s5 = inlined_call_operand.hbm [shape: f32[8,128], index: 5, kind: input, shape index: {}]   ;;  %s1503_s6 = inlined_call_operand.hbm [shape: f32[8,128], index: 6, kind: input, shape index: {}]   ;;  %s1504_s7 = inlined_call_operand.vmem [shape: f32[128,128], index: 7, kind: input, shape index: {}]   ;;  %s1505_s8 = inlined_call_operand.vmem [shape: f32[8,128], index: 8, kind: output, shape index: {}]  }
   0x1   :  { %14 = vsyncpa [#allocation5], 0  ;;  %s1186_s27 = smov [#allocation2]   ;;  %s1187_s29 = smov [#allocation4]  }
   0x2   :  { %s31_s28 = sshll.u32 %s1186_s27, 4  ;;  %s41_s30 = sshll.u32 %s1187_s29, 4  ;;  %s32_s28 = int_to_ptr.vmem [resolvable:$true] %s31_s28  ;;  %s42_s30 = int_to_ptr.vmem [resolvable:$true] %s41_s30 }
   0x3   :  { %s1150_s9 = scalar_lea.vmem %s32_s28, 128  ;;  %p1155_p1 = scmp.lt.s32.totalorder %s32_s28, %s32_s28 }
   0x4   :  { %p1151_p0 = scmp.ne.s32.totalorder %s32_s28, %s1150_s9  ;;  %p1156_p2 = scmp.lt.s32.totalorder %s1150_s9, %s1150_s9 }
   0x6   :  { %p1157_p3 = por %p1156_p2, %p1155_p1 }
   0x8   :  { %p1158_p4 = pnand %p1157_p3, %p1151_p0 }
   0xa   :  { %1161 = shalt.err (!%p1158_p4)
}
   0xb   :  { %34 = dma.hbm_to_vmem [thread:$0]  %s1502_s5, 128, %s32_s28, [#allocation3]  }
   0xc   :  { %s1170_s12 = scalar_lea.vmem %s42_s30, 128  ;;  %p1175_p6 = scmp.lt.s32.totalorder %s42_s30, %s42_s30 }
   0xd   :  { %p1171_p5 = scmp.ne.s32.totalorder %s42_s30, %s1170_s12  ;;  %p1176_p7 = scmp.lt.s32.totalorder %s1170_s12, %s1170_s12 }
   0xf   :  { %p1177_p8 = por %p1176_p7, %p1175_p6 }
  0x11   :  { %p1178_p9 = pnand %p1177_p8, %p1171_p5 }
  0x13   :  { %1181 = shalt.err (!%p1178_p9)
}
  0x14   :  { %44 = dma.hbm_to_vmem [thread:$0]  %s1503_s6, 128, %s42_s30, [#allocation5]  }
  0x15   :  { %1182 = dma.done.wait [#allocation3], 128  }
  0x16   :  { %1183 = vsyncadd [#allocation3], 4294967168 }
  0x17   :  { %1184 = dma.done.wait [#allocation5], 128  }
  0x18   :  { %1185 = vsyncadd [#allocation5], 4294967168  ;;  %v1188_v0 = vmov 0.0   ;;  %vm1189_vm0 = vmmov 0   ;;  %vm57_vm1 = vcmask 64512   ;;  %v56_v1 = vld [vmem:[#allocation4] sm:$0xff] }
  0x19   :  { %980 = vmatprep.subr.mxu0 %v1188_v0  ;;  %982 = vmatprep.mubr.msk.f32.mxu0 %vm1189_vm0, %v1188_v0  ;;  %v53_v2 = vld [vmem:[%s1498_s1] sm:$0xff]  ;;  %v54_v3 = vld [vmem:[%s1498_s1 + $0x8] sm:$0xff]  ;;  %v55_v4 = vld [vmem:[%s1498_s1 + $0x10] sm:$0xff]  ;;  %vm152_vm2 = vcmask 195584   ;;  %vm319_vm3 = vcmask 130048  }
  0x1a   :  { %981 = vmatpush3.msra.mxu0 %v56_v1  ;;  %v149_v5 = vld [vmem:[#allocation2] sm:$0xff]  ;;  %v148_v7 = vld [vmem:[%s1497_s0 + $0x8] sm:$0xff]  ;;  %v1286_v17 = vld [vmem:[%s1504_s7 + $0x78] sm:$0xff] }
  0x1b   :  { %983 = vmatmul.mubr.msk.f32.vlgmr.msra.gmra.mxu0 %vm57_vm1, %v53_v2  ;;  %1000 = vmatprep.subr.mxu1 %v149_v5  ;;  %v147_v6 = vld [vmem:[%s1497_s0] sm:$0xff]  ;;  %v151_v15 = vld [vmem:[%s1499_s2 + $0x8] sm:$0xff]  ;;  %v1291_v18 = vld [vmem:[%s1504_s7 + $0x70] sm:$0xff] }
  0x1c   :  { %985 = vmatprep.mubr.msk.f32.mxu0 %vm1189_vm0, %v1188_v0  ;;  %1001 = vmatpush3.msra.mxu1 %v149_v5  ;;  %v150_v8 = vld [vmem:[%s1499_s2] sm:$0xff]  ;;  %v1298_v19 = vld [vmem:[%s1504_s7 + $0x68] sm:$0xff]  ;;  %v1312_v21 = vld [vmem:[%s1504_s7 + $0x58] sm:$0xff] }
  0x1d   :  { %1002 = vmatprep.mubr.msk.f32.mxu1 %vm57_vm1, %v147_v6  ;;  %v1279_v16 = vld [vmem:[%s1500_s3] sm:$0xff]  ;;  %1012 = vmatprep.subr.mxu1 %v1286_v17  ;;  %v1319_v22 = vld [vmem:[%s1504_s7 + $0x50] sm:$0xff]  ;;  %v1326_v23 = vld [vmem:[%s1504_s7 + $0x48] sm:$0xff] }
  0x1e   :  { %1003 = vmatmul.mubr.msk.f32.vlgmr.msra.gmra.mxu1 %vm57_vm1, %v148_v7  ;;  %v1305_v20 = vld [vmem:[%s1504_s7 + $0x60] sm:$0xff]  ;;  %v1340_v25 = vld [vmem:[%s1504_s7 + $0x38] sm:$0xff]  ;;  %v1347_v26 = vld [vmem:[%s1504_s7 + $0x30] sm:$0xff] }
  0x1f   :  { %986 = vmatmul.mubr.msk.f32.gmra.mxu0 %vm57_vm1, %v54_v3  ;;  %1013 = vmatpush3.msra.mxu1 %v1286_v17  ;;  %v1333_v24 = vld [vmem:[%s1504_s7 + $0x40] sm:$0xff]  ;;  %v1354_v27 = vld [vmem:[%s1504_s7 + $0x28] sm:$0xff]  ;;  %v1368_v29 = vld [vmem:[%s1504_s7 + $0x18] sm:$0xff] }
  0x20   :  { %988 = vmatprep.mubr.msk.f32.mxu0 %vm1189_vm0, %v1188_v0  ;;  %1014 = vmatprep.subr.mxu1 %v1291_v18  ;;  %v1361_v28 = vld [vmem:[%s1504_s7 + $0x20] sm:$0xff]  ;;  %v1375_v30 = vld [vmem:[%s1504_s7 + $0x10] sm:$0xff]  ;;  %v1390_v39 = vld [vmem:[%s1500_s3 + $0x8] sm:$0xff] }
  0x21   :  { %1015 = vmatpush3.msra.mxu1 %v1291_v18  ;;  %v1399_v40 = vld [vmem:[%s1504_s7 + $0x8] sm:$0xff]  ;;  %v1406_v41 = vld [vmem:[%s1504_s7] sm:$0xff] }
  0x22   :  { %1016 = vmatprep.subr.mxu1 %v1298_v19  ;;  %v804_v3 = vld [vmem:[%s1501_s4] sm:$0xff] }
  0x23   :  { %989 = vmatmul.mubr.msk.f32.gmra.mxu0 %vm57_vm1, %v55_v4  ;;  %1017 = vmatpush3.msra.mxu1 %v1298_v19 }
  0x24   :  { %997 = vmatprep.mubr.msk.f32.mxu0 %vm152_vm2, %v150_v8  ;;  %1018 = vmatprep.subr.mxu1 %v1305_v20 }
  0x25   :  { %1019 = vmatpush3.msra.mxu1 %v1305_v20 }
  0x26   :  { %1020 = vmatprep.subr.mxu1 %v1312_v21 }
  0x27   :  { %1021 = vmatpush3.msra.mxu1 %v1312_v21 }
  0x28   :  { %1022 = vmatprep.subr.mxu1 %v1319_v22 }
  0x29   :  { %1023 = vmatpush3.msra.mxu1 %v1319_v22 }
  0x2a   :  { %1024 = vmatprep.subr.mxu1 %v1326_v23 }
  0x2b   :  { %1025 = vmatpush3.msra.mxu1 %v1326_v23 }
  0x2c   :  { %1026 = vmatprep.subr.mxu1 %v1333_v24 }
  0x2d   :  { %1027 = vmatpush3.msra.mxu1 %v1333_v24 }
  0x2e   :  { %1028 = vmatprep.subr.mxu1 %v1340_v25 }
  0x2f   :  { %1029 = vmatpush3.msra.mxu1 %v1340_v25 }
  0x30   :  { %1030 = vmatprep.subr.mxu1 %v1347_v26 }
  0x31   :  { %1031 = vmatpush3.msra.mxu1 %v1347_v26 }
  0x32   :  { %1032 = vmatprep.subr.mxu1 %v1354_v27 }
  0x33   :  { %1033 = vmatpush3.msra.mxu1 %v1354_v27 }
  0x34   :  { %1034 = vmatprep.subr.mxu1 %v1361_v28 }
  0x35   :  { %1035 = vmatpush3.msra.mxu1 %v1361_v28 }
  0x36   :  { %1036 = vmatprep.subr.mxu1 %v1368_v29 }
  0x37   :  { %1037 = vmatpush3.msra.mxu1 %v1368_v29 }
  0x38   :  { %1038 = vmatprep.subr.mxu1 %v1375_v30 }
  0x39   :  { %1039 = vmatpush3.msra.mxu1 %v1375_v30 }
  0x3a   :  { %1040 = vmatprep.subr.mxu1 %v1399_v40 }
  0x3b   :  { %1041 = vmatpush3.msra.mxu1 %v1399_v40 }
  0x3c   :  { %1042 = vmatprep.subr.mxu1 %v1406_v41 }
  0x3d   :  { %1043 = vmatpush3.msra.mxu1 %v1406_v41 }
  0x3e   :  { %1096 = vmatprep.subr.mxu1 %v1286_v17 }
  0xdb   :  { %v133_v9 = vpop.f32.mrf.mxu0 }
  0xdd   :  { %v984_v10 = vpop.f32.mrf.mxu0 }
  0xde   :  { %v1004_v31 = vpop.f32.mrf.mxu1 }
  0xdf   :  { %v138_v11 = vpop.f32.mrf.mxu0 }
  0xe0   :  { %v306_v35 = vpop.f32.mrf.mxu1 }
  0xe1   :  { %v987_v12 = vpop.f32.mrf.mxu0 }
  0xe3   :  { %v143_v13 = vpop.f32.mrf.mxu0 }
  0xe4   :  { %991 = vmatprep.subr.mxu0 %v143_v13 }
  0xe5   :  { %v990_v14 = vpop.f32.mrf.mxu0  ;;  %992 = vmatpush3.msra.mxu0 %v143_v13 }
  0xe6   :  { %993 = vmatprep.subr.mxu0 %v138_v11 }
  0xe7   :  { %994 = vmatpush3.msra.mxu0 %v138_v11 }
  0xe8   :  { %995 = vmatprep.subr.mxu0 %v133_v9 }
  0xe9   :  { %996 = vmatpush3.msra.mxu0 %v133_v9 }
  0xea   :  { %998 = vmatmul.mubr.msk.f32.vlgmr.msra.gmra.mxu0 %vm152_vm2, %v151_v15 }
  0xeb   :  { %1009 = vmatprep.mubr.msk.f32.mxu0 %vm319_vm3, %v1279_v16 }
 0x1aa   :  { %v999_v32 = vpop.f32.mrf.mxu0 }
 0x1ab   :  { %v1381_v33 = vadd.f32 %v1004_v31, %v999_v32 }
 0x1ac   :  { %v225_v34 = vpop.f32.mrf.mxu0 }
 0x1ad   :  { %v1383_v36 = vadd.f32 %v306_v35, %v225_v34  ;;  %v316_v37 = vmax.f32 %v1381_v33, 0.0 }
 0x1af   :  { %1005 = vmatprep.subr.mxu0 %v316_v37  ;;  %v315_v38 = vmax.f32 %v1383_v36, 0.0 }
 0x1b0   :  { %1006 = vmatpush3.msra.mxu0 %v316_v37 }
 0x1b1   :  { %1007 = vmatprep.subr.mxu0 %v315_v38 }
 0x1b2   :  { %1008 = vmatpush3.msra.mxu0 %v315_v38 }
 0x1b3   :  { %1010 = vmatmul.mubr.msk.f32.vlgmr.msra.gmra.mxu0 %vm319_vm3, %v1390_v39 }
 0x1b4   :  { %1051 = vmatprep.mubr.msk.f32.mxu0 %vm319_vm3, %v1279_v16 }
 0x273   :  { %v1011_v42 = vpop.f32.mrf.mxu0 }
 0x275   :  { %v392_v43 = vpop.f32.mrf.mxu0 }
 0x276   :  { %1044 = vmatprep.mubr.f32.mxu1 %v392_v43 }
 0x277   :  { %1045 = vmatmul.mubr.f32.vlgmr.msra.gmra.mxu1 %v1011_v42 }
 0x278   :  { %1097 = vmatpush3.msra.mxu1 %v1286_v17 }
 0x279   :  { %1098 = vmatprep.subr.mxu1 %v1291_v18 }
 0x27a   :  { %1099 = vmatpush3.msra.mxu1 %v1291_v18 }
 0x27b   :  { %1100 = vmatprep.subr.mxu1 %v1298_v19 }
 0x27c   :  { %1101 = vmatpush3.msra.mxu1 %v1298_v19 }
 0x27d   :  { %1102 = vmatprep.subr.mxu1 %v1305_v20 }
 0x27e   :  { %1103 = vmatpush3.msra.mxu1 %v1305_v20 }
 0x27f   :  { %1104 = vmatprep.subr.mxu1 %v1312_v21 }
 0x280   :  { %1105 = vmatpush3.msra.mxu1 %v1312_v21 }
 0x281   :  { %1106 = vmatprep.subr.mxu1 %v1319_v22 }
 0x282   :  { %1107 = vmatpush3.msra.mxu1 %v1319_v22 }
 0x283   :  { %1108 = vmatprep.subr.mxu1 %v1326_v23 }
 0x284   :  { %1109 = vmatpush3.msra.mxu1 %v1326_v23 }
 0x285   :  { %1110 = vmatprep.subr.mxu1 %v1333_v24 }
 0x286   :  { %1111 = vmatpush3.msra.mxu1 %v1333_v24 }
 0x287   :  { %1112 = vmatprep.subr.mxu1 %v1340_v25 }
 0x288   :  { %1113 = vmatpush3.msra.mxu1 %v1340_v25 }
 0x289   :  { %1114 = vmatprep.subr.mxu1 %v1347_v26 }
 0x28a   :  { %1115 = vmatpush3.msra.mxu1 %v1347_v26 }
 0x28b   :  { %1116 = vmatprep.subr.mxu1 %v1354_v27 }
 0x28c   :  { %1117 = vmatpush3.msra.mxu1 %v1354_v27 }
 0x28d   :  { %1118 = vmatprep.subr.mxu1 %v1361_v28 }
 0x28e   :  { %1119 = vmatpush3.msra.mxu1 %v1361_v28 }
 0x28f   :  { %1120 = vmatprep.subr.mxu1 %v1368_v29 }
 0x290   :  { %1121 = vmatpush3.msra.mxu1 %v1368_v29 }
 0x291   :  { %1122 = vmatprep.subr.mxu1 %v1375_v30 }
 0x292   :  { %1123 = vmatpush3.msra.mxu1 %v1375_v30 }
 0x293   :  { %1124 = vmatprep.subr.mxu1 %v1399_v40 }
 0x294   :  { %1125 = vmatpush3.msra.mxu1 %v1399_v40 }
 0x295   :  { %1126 = vmatprep.subr.mxu1 %v1406_v41 }
 0x296   :  { %1127 = vmatpush3.msra.mxu1 %v1406_v41 }
 0x337   :  { %v1046_v44 = vpop.f32.mrf.mxu1 }
 0x338   :  { %v493_v45 = vadd.f32 %v1046_v44, %v1381_v33 }
 0x339   :  { %v483_v46 = vpop.f32.mrf.mxu1 }
 0x33a   :  { %v495_v47 = vmax.f32 %v493_v45, 0.0  ;;  %v492_v48 = vadd.f32 %v483_v46, %v1383_v36 }
 0x33c   :  { %v494_v49 = vmax.f32 %v492_v48, 0.0  ;;  %1047 = vmatprep.subr.mxu0 %v495_v47 }
 0x33d   :  { %1048 = vmatpush3.msra.mxu0 %v495_v47 }
 0x33e   :  { %1049 = vmatprep.subr.mxu0 %v494_v49 }
 0x33f   :  { %1050 = vmatpush3.msra.mxu0 %v494_v49 }
 0x340   :  { %1052 = vmatmul.mubr.msk.f32.vlgmr.msra.gmra.mxu0 %vm319_vm3, %v1390_v39  ;;  %1054 = vmatprep.subr.mxu0 %v1286_v17 }
 0x341   :  { %1055 = vmatpush3.msra.mxu0 %v1286_v17 }
 0x342   :  { %1056 = vmatprep.subr.mxu0 %v1291_v18 }
 0x343   :  { %1057 = vmatpush3.msra.mxu0 %v1291_v18 }
 0x344   :  { %1058 = vmatprep.subr.mxu0 %v1298_v19 }
 0x345   :  { %1059 = vmatpush3.msra.mxu0 %v1298_v19 }
 0x346   :  { %1060 = vmatprep.subr.mxu0 %v1305_v20 }
 0x347   :  { %1061 = vmatpush3.msra.mxu0 %v1305_v20 }
 0x348   :  { %1062 = vmatprep.subr.mxu0 %v1312_v21 }
 0x349   :  { %1063 = vmatpush3.msra.mxu0 %v1312_v21 }
 0x34a   :  { %1064 = vmatprep.subr.mxu0 %v1319_v22 }
 0x34b   :  { %1065 = vmatpush3.msra.mxu0 %v1319_v22 }
 0x34c   :  { %1066 = vmatprep.subr.mxu0 %v1326_v23 }
 0x34d   :  { %1067 = vmatpush3.msra.mxu0 %v1326_v23 }
 0x34e   :  { %1068 = vmatprep.subr.mxu0 %v1333_v24 }
 0x34f   :  { %1069 = vmatpush3.msra.mxu0 %v1333_v24 }
 0x350   :  { %1070 = vmatprep.subr.mxu0 %v1340_v25 }
 0x351   :  { %1071 = vmatpush3.msra.mxu0 %v1340_v25 }
 0x352   :  { %1072 = vmatprep.subr.mxu0 %v1347_v26 }
 0x353   :  { %1073 = vmatpush3.msra.mxu0 %v1347_v26 }
 0x354   :  { %1074 = vmatprep.subr.mxu0 %v1354_v27 }
 0x355   :  { %1075 = vmatpush3.msra.mxu0 %v1354_v27 }
 0x356   :  { %1076 = vmatprep.subr.mxu0 %v1361_v28 }
 0x357   :  { %1077 = vmatpush3.msra.mxu0 %v1361_v28 }
 0x358   :  { %1078 = vmatprep.subr.mxu0 %v1368_v29 }
 0x359   :  { %1079 = vmatpush3.msra.mxu0 %v1368_v29 }
 0x35a   :  { %1080 = vmatprep.subr.mxu0 %v1375_v30 }
 0x35b   :  { %1081 = vmatpush3.msra.mxu0 %v1375_v30 }
 0x35c   :  { %1082 = vmatprep.subr.mxu0 %v1399_v40 }
 0x35d   :  { %1083 = vmatpush3.msra.mxu0 %v1399_v40 }
 0x35e   :  { %1084 = vmatprep.subr.mxu0 %v1406_v41 }
 0x35f   :  { %1085 = vmatpush3.msra.mxu0 %v1406_v41 }
 0x400   :  { %v1053_v50 = vpop.f32.mrf.mxu0 }
 0x402   :  { %v562_v51 = vpop.f32.mrf.mxu0 }
 0x403   :  { %1086 = vmatprep.mubr.f32.mxu0 %v562_v51 }
 0x404   :  { %1087 = vmatmul.mubr.f32.vlgmr.msra.gmra.mxu0 %v1053_v50 }
 0x405   :  { %1093 = vmatprep.mubr.msk.f32.mxu0 %vm319_vm3, %v1279_v16 }
 0x4c4   :  { %v1088_v52 = vpop.f32.mrf.mxu0 }
 0x4c5   :  { %v647_v53 = vadd.f32 %v1088_v52, %v1381_v33 }
 0x4c6   :  { %v637_v54 = vpop.f32.mrf.mxu0 }
 0x4c7   :  { %v649_v55 = vmax.f32 %v647_v53, 0.0  ;;  %v646_v56 = vadd.f32 %v637_v54, %v1383_v36 }
 0x4c9   :  { %v648_v57 = vmax.f32 %v646_v56, 0.0  ;;  %1089 = vmatprep.subr.mxu0 %v649_v55 }
 0x4ca   :  { %1090 = vmatpush3.msra.mxu0 %v649_v55 }
 0x4cb   :  { %1091 = vmatprep.subr.mxu0 %v648_v57 }
 0x4cc   :  { %1092 = vmatpush3.msra.mxu0 %v648_v57 }
 0x4cd   :  { %1094 = vmatmul.mubr.msk.f32.vlgmr.msra.gmra.mxu0 %vm319_vm3, %v1390_v39  ;;  %1131 = vmatprep.subr.mxu0 %v1188_v0 }
 0x4ce   :  { %1135 = vmatprep.mubr.msk.f32.mxu0 %vm1189_vm0, %v1188_v0 }
 0x58d   :  { %v1095_v58 = vpop.f32.mrf.mxu0 }
 0x58f   :  { %v716_v59 = vpop.f32.mrf.mxu0 }
 0x590   :  { %1128 = vmatprep.mubr.f32.mxu1 %v716_v59 }
 0x591   :  { %1129 = vmatmul.mubr.f32.vlgmr.msra.gmra.mxu1 %v1095_v58 }
 0x651   :  { %v1130_v60 = vpop.f32.mrf.mxu1 }
 0x652   :  { %v801_v61 = vadd.f32 %v1130_v60, %v1381_v33 }
 0x653   :  { %v791_v62 = vpop.f32.mrf.mxu1 }
 0x654   :  { %v803_v63 = vmax.f32 %v801_v61, 0.0  ;;  %v800_v1 = vadd.f32 %v791_v62, %v1383_v36 }
 0x656   :  { %v802_v2 = vmax.f32 %v800_v1, 0.0  ;;  %1132 = vmatpush3.msra.mxu0 %v803_v63 }
 0x657   :  { %1133 = vmatprep.subr.mxu0 %v1188_v0 }
 0x658   :  { %1134 = vmatpush3.msra.mxu0 %v802_v2 }
 0x659   :  { %1136 = vmatmul.mubr.msk.f32.vlgmr.msra.gmra.mxu0 %vm319_vm3, %v804_v3 }
 0x719   :  { %v874_v4 = vpop.f32.mrf.mxu0 }
 0x71a   :  { %878 = vst [vmem:[%s1505_s8] sm:$0xff] %v874_v4 }
 0x71b   :  { %v1137_v5 = vpop.f32.mrf.mxu0 }
 0x71c   :  { %883 = vsyncpa [#allocation3], 1 }
 0x71d   :  { %884 = vsyncpa [#allocation5], 1 }

</bundles_post_ra>
